<compile_context>
chip_gen: v6e
topology: v6e:2x2x1
jax: 0.10.0
libtpu: 0.0.40
codegen_flags: <defaults>
</compile_context>

<pallas_src>
import jax
import jax.numpy as jnp
from jax.experimental import pallas as pl
from jax.experimental.pallas import tpu as pltpu

_MIN_CHUNK_BYTES = 4 * 1024 * 1024  # aim for >= ~4 MiB per DMA chunk


def _make_identity_dma_kernel(num_chunks: int):
    """Build a kernel copying x (HBM) -> o (HBM) with `num_chunks` concurrent DMAs."""

    def kernel(x_hbm, o_hbm, sems):
        # Start every chunk's DMA first so they are all in flight...
        for c in range(num_chunks):
            pltpu.make_async_copy(x_hbm.at[c], o_hbm.at[c], sems.at[c]).start()
        # ...then wait for all of them.
        for c in range(num_chunks):
            pltpu.make_async_copy(x_hbm.at[c], o_hbm.at[c], sems.at[c]).wait()

    return kernel


def _choose_num_chunks(n_elems: int, itemsize: int) -> int:
    """Most chunks (<=8) that evenly divide the data while keeping >=4 MiB chunks."""
    total_bytes = n_elems * itemsize
    for c in (8, 4, 2):
        if n_elems % c == 0 and total_bytes // c >= _MIN_CHUNK_BYTES:
            return c
    return 1


def my_model_forward(x: jax.Array) -> jax.Array:
    """MyModel.forward: identity, materialized as one chunked HBM->HBM DMA kernel."""
    orig_shape = x.shape
    n = x.size
    if n == 0:
        return x

    num_chunks = _choose_num_chunks(n, jnp.dtype(x.dtype).itemsize)
    # Contiguous reshape: free, no extra HBM pass. Works for any n (chunks=1 always divides).
    slab = x.reshape(num_chunks, n // num_chunks)

    out = pl.pallas_call(
        _make_identity_dma_kernel(num_chunks),
        out_shape=jax.ShapeDtypeStruct(slab.shape, slab.dtype),
        in_specs=[pl.BlockSpec(memory_space=pl.ANY)],   # stay in HBM, no auto-DMA tiling
        out_specs=pl.BlockSpec(memory_space=pl.ANY),    # output allocated in HBM
        scratch_shapes=[pltpu.SemaphoreType.DMA((num_chunks,))],
    )(slab)

    return out.reshape(orig_shape)


if __name__ == "__main__":
    # MyModel(arg1, arg2) has no parameters; forward(x) = x.
    key = jax.random.PRNGKey(0)
    x = jax.random.normal(key, (2, 4, 16, 16), dtype=jnp.float32)  # NCHW

    y = my_model_forward(x)
    jax.block_until_ready(y)

    assert y.shape == x.shape and y.dtype == x.dtype
    assert bool(jnp.all(y == x))
    print("KERNEL_OK")
</pallas_src>

<mosaic_0001>
module attributes {stable_mosaic.version = 11 : i64} {
  func.func @kernel(%arg0: memref<1x2048xf32, #tpu.memory_space<any>>, %arg1: memref<1x2048xf32, #tpu.memory_space<any>>, %arg2: memref<1x!tpu.dma_semaphore, #tpu.memory_space<semaphore_mem>>) attributes {dimension_semantics = [], scalar_prefetch = 0 : i64, scratch_operands = 1 : i64, tpu.core_type = #tpu.core_type<tc>} {
    %c0_i32 = arith.constant 0 : i32
    %c0_i32_0 = arith.constant 0 : i32
    %c0_i32_1 = arith.constant 0 : i32
    %c0_i32_2 = arith.constant 0 : i32
    %0 = tpu.memref_slice %arg0[%c0_i32, %c0_i32_2] : memref<1x2048xf32, #tpu.memory_space<any>> -> memref<1x2048xf32, #tpu.memory_space<any>>
    %1 = tpu.memref_squeeze %0 : memref<1x2048xf32, #tpu.memory_space<any>> -> memref<2048xf32, #tpu.memory_space<any>>
    %c0_i32_3 = arith.constant 0 : i32
    %2 = tpu.memref_slice %arg1[%c0_i32_0, %c0_i32_3] : memref<1x2048xf32, #tpu.memory_space<any>> -> memref<1x2048xf32, #tpu.memory_space<any>>
    %3 = tpu.memref_squeeze %2 : memref<1x2048xf32, #tpu.memory_space<any>> -> memref<2048xf32, #tpu.memory_space<any>>
    %4 = tpu.memref_slice %arg2[%c0_i32_1] : memref<1x!tpu.dma_semaphore, #tpu.memory_space<semaphore_mem>> -> memref<1x!tpu.dma_semaphore, #tpu.memory_space<semaphore_mem>>
    %5 = tpu.memref_squeeze %4 : memref<1x!tpu.dma_semaphore, #tpu.memory_space<semaphore_mem>> -> memref<!tpu.dma_semaphore, #tpu.memory_space<semaphore_mem>>
    tpu.enqueue_dma source(%1 : memref<2048xf32, #tpu.memory_space<any>>) target(%3 : memref<2048xf32, #tpu.memory_space<any>>) target_semaphore(%5 : memref<!tpu.dma_semaphore, #tpu.memory_space<semaphore_mem>>)
    %c0_i32_4 = arith.constant 0 : i32
    %c0_i32_5 = arith.constant 0 : i32
    %c0_i32_6 = arith.constant 0 : i32
    %c0_i32_7 = arith.constant 0 : i32
    %6 = tpu.memref_slice %arg0[%c0_i32_4, %c0_i32_7] : memref<1x2048xf32, #tpu.memory_space<any>> -> memref<1x2048xf32, #tpu.memory_space<any>>
    %7 = tpu.memref_squeeze %6 : memref<1x2048xf32, #tpu.memory_space<any>> -> memref<2048xf32, #tpu.memory_space<any>>
    %c0_i32_8 = arith.constant 0 : i32
    %8 = tpu.memref_slice %arg1[%c0_i32_5, %c0_i32_8] : memref<1x2048xf32, #tpu.memory_space<any>> -> memref<1x2048xf32, #tpu.memory_space<any>>
    %9 = tpu.memref_squeeze %8 : memref<1x2048xf32, #tpu.memory_space<any>> -> memref<2048xf32, #tpu.memory_space<any>>
    %10 = tpu.memref_slice %arg2[%c0_i32_6] : memref<1x!tpu.dma_semaphore, #tpu.memory_space<semaphore_mem>> -> memref<1x!tpu.dma_semaphore, #tpu.memory_space<semaphore_mem>>
    %11 = tpu.memref_squeeze %10 : memref<1x!tpu.dma_semaphore, #tpu.memory_space<semaphore_mem>> -> memref<!tpu.dma_semaphore, #tpu.memory_space<semaphore_mem>>
    tpu.wait_dma2 semaphore(%11 : memref<!tpu.dma_semaphore, #tpu.memory_space<semaphore_mem>>) src(%7 : memref<2048xf32, #tpu.memory_space<any>>) dst(%9 : memref<2048xf32, #tpu.memory_space<any>>)
    return
  }
}

</mosaic_0001>

<bundles_post_ra>
// kernel: tpu_custom_call.1
= control target key start
LH: loop header
LB: loop body
LE: loop exit
PB: predicated region body
PF: predicated region fallthrough
CT: control target
= control target key end

     0   :  { %s27_s6 = smov [#allocation2]   ;;  %s28_s7 = smov 131072   ;;  %s46_s0 = inlined_call_operand.hbm [shape: f32[1,2048], index: 0, kind: input, shape index: {}]   ;;  %s47_s1 = inlined_call_operand.hbm [shape: f32[1,2048], index: 1, kind: output, shape index: {}]  }
   0x1   :  { %s29_s8 = smov 0  }
   0x2   :  { %12 = dma.general %s46_s0, 256, %s47_s1, %s27_s6, %s28_s7, [#allocation4], %s29_s8, 0  }
   0x3   :  { %25 = dma.done.wait [#allocation2], 256 }
   0x4   :  { %26 = vsyncadd [#allocation2], 4294967040 }
   0x5   :  { %15 = vsyncmov [#allocation2] }
   0x8   :  { %s16_s13 = vpop.sfrf %15 }
   0x9   :  { %p21_p0 = scmp.ne.s32.totalorder %s16_s13, 0 }
   0xb   :  { %20 = shalt.err (%p21_p0)  }

</bundles_post_ra>
